<compile_context>
chip_gen: v5e
topology: v5e:2x2
jax: 0.10.0
libtpu: 0.0.40
codegen_flags: <defaults>
</compile_context>

<pallas_src>
import jax
import jax.numpy as jnp
from jax.experimental import pallas as pl
from jax.experimental.pallas import tpu as pltpu


_LANE = 128          # TPU lane width: pad the class axis to a multiple of this
_NEG = -1e30         # finite "-inf" for padded class columns (exp underflows to 0)


# ---------------------------------------------------------------------------
# Kernels
# ---------------------------------------------------------------------------
def _head_kernel(x_ref, w_ref, b_ref, o_ref):
    """Resident-weight path: whole (K, Np) weight lives in VMEM."""
    # x arrives as f32; cast to bf16 in-kernel (no extra HBM pass for the cast).
    logits = jnp.dot(x_ref[...].astype(w_ref.dtype), w_ref[...],
                     preferred_element_type=jnp.float32) + b_ref[...]
    # Numerically stable log_softmax along the class axis (dim=1).
    # Padded class columns carry a -1e30 bias: they never win the max and
    # exp() underflows to 0, so the normalizer only sees real classes.
    m = jnp.max(logits, axis=-1, keepdims=True)
    shifted = logits - m
    lse = jnp.log(jnp.sum(jnp.exp(shifted), axis=-1, keepdims=True))
    o_ref[...] = (shifted - lse).astype(o_ref.dtype)


def _make_ktiled_kernel(k_total, tk, need_k_mask):
    """K-tiled path: grid=(batch_tiles, k_tiles), f32 accumulator scratch."""

    def kernel(x_ref, w_ref, b_ref, o_ref, acc_ref):
        kk = pl.program_id(1)

        @pl.when(kk == 0)
        def _():
            acc_ref[...] = jnp.zeros_like(acc_ref)

        x_blk = x_ref[...]
        if need_k_mask:
            # Ragged last K block: zero the out-of-range columns so that
            # (masked 0) x (zero-padded weight rows) contributes exactly 0
            # (avoids NaN from garbage * 0).
            col = jax.lax.broadcasted_iota(jnp.int32, x_blk.shape, 1) + kk * tk
            x_blk = jnp.where(col < k_total, x_blk, 0.0)
        acc_ref[...] += jnp.dot(x_blk.astype(w_ref.dtype), w_ref[...],
                                preferred_element_type=jnp.float32)

        @pl.when(kk == pl.num_programs(1) - 1)
        def _():
            logits = acc_ref[...] + b_ref[...]
            m = jnp.max(logits, axis=-1, keepdims=True)
            shifted = logits - m
            lse = jnp.log(jnp.sum(jnp.exp(shifted), axis=-1, keepdims=True))
            o_ref[...] = (shifted - lse).astype(o_ref.dtype)

    return kernel


# ---------------------------------------------------------------------------
# Tiling helpers
# ---------------------------------------------------------------------------
def _round_up(v, m):
    return ((v + m - 1) // m) * m


def _vmem_budget_bytes():
    """Generation-aware VMEM budget (~3/4 of physical; headroom for compiler)."""
    cap = 64 * 1024 * 1024  # conservative fallback = v7x per-TC physical VMEM
    try:
        info = pltpu.get_tpu_info()
        for attr in ("vmem_capacity_bytes", "vmem_size_bytes", "vmem_bytes"):
            v = getattr(info, attr, None)
            if isinstance(v, int) and v > 0:
                cap = v
                break
    except Exception:
        pass
    # v5e/v6e (128 MiB) -> ~96 MiB ; v7x (64 MiB/TC) -> ~48 MiB.
    return int((cap * 3) // 4)


def _choose_tiles(b, k, n_pad, w_bytes, x_bytes, vmem_budget, force_k_tile=None):
    """Returns (tb, tk).  tk == k selects the resident-weight path."""
    out_bytes = 4
    if force_k_tile is None and k * n_pad * w_bytes <= vmem_budget // 4:
        tk = k
        # 1x weight (single-buffered) + bias + slack
        resident = k * n_pad * w_bytes + n_pad * 4 + (1 << 20)
        # 3x-buffered f32 x tile + 2x output tile + logits temporaries, per row
        per_row = 3 * k * x_bytes + 2 * n_pad * out_bytes + 2 * n_pad * 4
    else:
        if force_k_tile is not None:
            tk = force_k_tile
        else:
            tk = (vmem_budget // 8) // max(1, n_pad * w_bytes)
            tk = max(_LANE, min(8 * 1024, (tk // _LANE) * _LANE))
        # 2x weight block + bias + slack
        resident = 2 * tk * n_pad * w_bytes + n_pad * 4 + (1 << 20)
        # 2x x block + 2x output tile + acc scratch, per row
        per_row = 2 * tk * x_bytes + 2 * n_pad * out_bytes + n_pad * 4
    avail = max(vmem_budget - resident, per_row * 16)
    tb = max(16, min(512, (int(avail // per_row) // 16) * 16))
    # Ensure >=2 batch tiles when batch allows, so both v7x TCs get work.
    if b > 16:
        tb = min(tb, max(16, _round_up(pl.cdiv(b, 2), 16)))
    if tb >= b:
        tb = b              # single full-batch block (block == full dim is legal)
    return tb, tk


# ---------------------------------------------------------------------------
# Forward
# ---------------------------------------------------------------------------
def braindecode_nn_forward(x, weight, bias, *, compute_dtype=jnp.bfloat16,
                           batch_tile=None, k_tile=None):
    """BraindecodeNN forward.

    x:      (batch, time, eeg_chan, 1) float32
    weight: (eeg_chan * time, n_classes) -- rows indexed as chan*T + t
            (weight of the linear head applied to the rearranged
             (batch, chan, time) signal flattened chan-major)
    bias:   (n_classes,)
    Returns (batch, n_classes) float32 log-probabilities.
    """
    b, t, c, one = x.shape
    assert one == 1
    k, n = weight.shape
    assert k == c * t

    w_bytes = jnp.dtype(compute_dtype).itemsize
    x_bytes = jnp.dtype(x.dtype).itemsize
    n_pad = _round_up(n, _LANE)

    # Fold Rearrange('batch time chan 1 -> batch chan time') + flatten into a
    # one-time permutation of the (constant) weight rows: the activation is
    # flattened row-major as (B, T*C) with no transpose, so
    # w_perm[t*C + c] = weight[c*T + t].
    perm = (jnp.arange(c)[None, :] * t + jnp.arange(t)[:, None]).reshape(-1)
    w_perm = weight[perm, :].astype(compute_dtype)                      # (K, N)
    b_pad = jnp.pad(bias.reshape(1, n).astype(jnp.float32),
                    ((0, 0), (0, n_pad - n)), constant_values=_NEG)     # (1, Np)

    # Keep x in its native dtype: the reshape is a free row-major view; the
    # bf16 cast happens inside the kernel right before the MXU.
    x_flat = x.reshape(b, k)

    vmem_budget = _vmem_budget_bytes()
    tb, tk = _choose_tiles(b, k, n_pad, w_bytes, x_bytes, vmem_budget,
                           force_k_tile=k_tile)
    if batch_tile is not None:
        tb = batch_tile
    bt = pl.cdiv(b, tb)

    cost = pl.CostEstimate(
        flops=2 * b * k * n_pad,
        transcendentals=b * n_pad,
        bytes_accessed=(b * k * x_bytes          # activations (f32, single pass)
                        + k * n_pad * w_bytes    # weight
                        + n_pad * 4              # bias
                        + b * n * 4),            # narrow f32 output
    )

    if tk == k:
        # ----------------------- resident-weight path -----------------------
        w_pad = jnp.pad(w_perm, ((0, 0), (0, n_pad - n)))               # (K, Np)

        def build(use_pm):
            pm1 = dict(pipeline_mode=pl.Buffered(1)) if use_pm else {}
            pm3 = dict(pipeline_mode=pl.Buffered(3)) if use_pm else {}
            return pl.pallas_call(
                _head_kernel,
                out_shape=jax.ShapeDtypeStruct((b, n), jnp.float32),
                grid_spec=pl.GridSpec(
                    grid=(bt,),
                    in_specs=[
                        pl.BlockSpec((tb, k), lambda i: (i, 0), **pm3),     # x tiles
                        pl.BlockSpec((k, n_pad), lambda i: (0, 0), **pm1),  # weight
                        pl.BlockSpec((1, n_pad), lambda i: (0, 0), **pm1),  # bias
                    ],
                    # Narrow (masked) store of only the real class columns;
                    # ragged last batch block rows are never written back.
                    out_specs=pl.BlockSpec((tb, n_pad), lambda i: (i, 0)),
                ),
                compiler_params=pltpu.CompilerParams(
                    dimension_semantics=("parallel",),
                    vmem_limit_bytes=vmem_budget,
                ),
                cost_estimate=cost,
            )

        try:
            return build(True)(x_flat, w_pad, b_pad)
        except Exception:
            # Fallback if this JAX build rejects explicit pipeline_mode counts.
            return build(False)(x_flat, w_pad, b_pad)

    # --------------------------- K-tiled fallback ---------------------------
    k_blocks = pl.cdiv(k, tk)
    k_pad = k_blocks * tk
    # Zero-pad only the (constant) weight rows; x's K dim stays unpadded and
    # the ragged last K block is masked in-kernel.
    w_pad = jnp.pad(w_perm, ((0, k_pad - k), (0, n_pad - n)))           # (Kp, Np)
    kernel = _make_ktiled_kernel(k, tk, need_k_mask=(k_pad != k))

    def build(use_pm):
        pm1 = dict(pipeline_mode=pl.Buffered(1)) if use_pm else {}
        return pl.pallas_call(
            kernel,
            out_shape=jax.ShapeDtypeStruct((b, n), jnp.float32),
            grid_spec=pl.GridSpec(
                grid=(bt, k_blocks),
                in_specs=[
                    pl.BlockSpec((tb, tk), lambda i, kk: (i, kk)),       # x tiles
                    pl.BlockSpec((tk, n_pad), lambda i, kk: (kk, 0)),    # weight tiles
                    pl.BlockSpec((1, n_pad), lambda i, kk: (0, 0), **pm1),  # bias
                ],
                out_specs=pl.BlockSpec((tb, n_pad), lambda i, kk: (i, 0)),
                scratch_shapes=[pltpu.VMEM((tb, n_pad), jnp.float32)],
            ),
            compiler_params=pltpu.CompilerParams(
                dimension_semantics=("parallel", "arbitrary"),
                vmem_limit_bytes=vmem_budget,
            ),
            cost_estimate=cost,
        )

    try:
        return build(True)(x_flat, w_pad, b_pad)
    except Exception:
        return build(False)(x_flat, w_pad, b_pad)


if __name__ == "__main__":
    # ---- Test 1: resident-weight fast path ---------------------------------
    # Shapes per the module's forward contract: (batch, time, EEG chan, 1)
    batch, time, chan, n_classes = 4, 16, 8, 4
    key = jax.random.PRNGKey(0)
    kx, kw, kb = jax.random.split(key, 3)

    x = jax.random.normal(kx, (batch, time, chan, 1), dtype=jnp.float32)
    k_dim = chan * time
    weight = 0.05 * jax.random.normal(kw, (k_dim, n_classes), dtype=jnp.float32)
    bias = 0.01 * jax.random.normal(kb, (n_classes,), dtype=jnp.float32)

    out = jax.block_until_ready(braindecode_nn_forward(x, weight, bias))

    # Pure-JAX reference with the original module semantics
    # (Rearrange -> linear -> log_softmax), at matching bf16-in / f32-accum precision.
    x_bct = jnp.transpose(jnp.squeeze(x, axis=-1), (0, 2, 1)).reshape(batch, -1)
    ref_logits = jnp.dot(x_bct.astype(jnp.bfloat16), weight.astype(jnp.bfloat16),
                         preferred_element_type=jnp.float32) + bias
    ref = jax.nn.log_softmax(ref_logits, axis=1)
    assert out.shape == (batch, n_classes)
    assert jnp.allclose(out, ref, atol=2e-3, rtol=2e-3)

    # ---- Test 2: K-tiled fallback + ragged batch / ragged K blocks ---------
    batch2, time2, chan2, n2 = 20, 24, 8, 5        # K = 192 -> two 128-wide K tiles
    kx2, kw2, kb2 = jax.random.split(jax.random.PRNGKey(1), 3)
    x2 = jax.random.normal(kx2, (batch2, time2, chan2, 1), dtype=jnp.float32)
    k2 = chan2 * time2
    w2 = 0.05 * jax.random.normal(kw2, (k2, n2), dtype=jnp.float32)
    b2 = 0.01 * jax.random.normal(kb2, (n2,), dtype=jnp.float32)

    out2 = jax.block_until_ready(
        braindecode_nn_forward(x2, w2, b2, batch_tile=16, k_tile=128))

    x2_bct = jnp.transpose(jnp.squeeze(x2, axis=-1), (0, 2, 1)).reshape(batch2, -1)
    ref2_logits = jnp.dot(x2_bct.astype(jnp.bfloat16), w2.astype(jnp.bfloat16),
                          preferred_element_type=jnp.float32) + b2
    ref2 = jax.nn.log_softmax(ref2_logits, axis=1)
    assert out2.shape == (batch2, n2)
    assert jnp.allclose(out2, ref2, atol=2e-3, rtol=2e-3)

    print("KERNEL_OK")
</pallas_src>

<mosaic_0001>
module attributes {stable_mosaic.version = 11 : i64} {
  func.func @_head_kernel(%arg0: i32, %arg1: memref<4x128xf32, #tpu.memory_space<vmem>>, %arg2: memref<128x128xbf16, #tpu.memory_space<vmem>>, %arg3: memref<1x128xf32, #tpu.memory_space<vmem>>, %arg4: memref<4x128xf32, #tpu.memory_space<vmem>>) attributes {dimension_semantics = [#tpu.dimension_semantics<parallel>], iteration_bounds = array<i64: 1>, scalar_prefetch = 0 : i64, scratch_operands = 0 : i64, tpu.core_type = #tpu.core_type<tc>, window_params = [{transform_indices = @transform_0, window_bounds = array<i64: 4, 128>}, {pipeline_mode = #tpu.pipeline_mode<synchronous>, transform_indices = @transform_1, window_bounds = array<i64: 128, 128>}, {pipeline_mode = #tpu.pipeline_mode<synchronous>, transform_indices = @transform_2, window_bounds = array<i64: 1, 128>}, {transform_indices = @transform_3, window_bounds = array<i64: 4, 128>}]} {
    %c0 = arith.constant 0 : index
    %c0_0 = arith.constant 0 : index
    %0 = vector.load %arg1[%c0, %c0_0] : memref<4x128xf32, #tpu.memory_space<vmem>>, vector<4x128xf32>
    %1 = arith.truncf %0 : vector<4x128xf32> to vector<4x128xbf16>
    %c0_1 = arith.constant 0 : index
    %c0_2 = arith.constant 0 : index
    %2 = vector.load %arg2[%c0_1, %c0_2] : memref<128x128xbf16, #tpu.memory_space<vmem>>, vector<128x128xbf16>
    %cst = arith.constant dense<0.000000e+00> : vector<4x128xf32>
    %3 = tpu.matmul %1, %2, %cst {dimension_numbers = #tpu.dot_dimension_numbers<[1], [0], [0], [1], [0, 0, 1, 1], [], []>} : vector<4x128xbf16>, vector<128x128xbf16>, vector<4x128xf32> -> vector<4x128xf32>
    %c0_3 = arith.constant 0 : index
    %c0_4 = arith.constant 0 : index
    %4 = vector.load %arg3[%c0_3, %c0_4] : memref<1x128xf32, #tpu.memory_space<vmem>>, vector<1x128xf32>
    %5 = vector.broadcast %4 : vector<1x128xf32> to vector<4x128xf32>
    %6 = arith.addf %3, %5 : vector<4x128xf32>
    %cst_5 = arith.constant dense<0xFF800000> : vector<4xf32>
    %7 = vector.multi_reduction <maximumf>, %6, %cst_5 [1] : vector<4x128xf32> to vector<4xf32>
    %8 = vector.shape_cast %7 : vector<4xf32> to vector<4x1xf32>
    %9 = vector.broadcast %8 : vector<4x1xf32> to vector<4x128xf32>
    %10 = arith.subf %6, %9 : vector<4x128xf32>
    %11 = math.exp %10 : vector<4x128xf32>
    %cst_6 = arith.constant dense<0.000000e+00> : vector<4xf32>
    %12 = vector.multi_reduction <add>, %11, %cst_6 [1] : vector<4x128xf32> to vector<4xf32>
    %13 = vector.shape_cast %12 : vector<4xf32> to vector<4x1xf32>
    %14 = math.log %13 : vector<4x1xf32>
    %15 = vector.broadcast %14 : vector<4x1xf32> to vector<4x128xf32>
    %16 = arith.subf %10, %15 : vector<4x128xf32>
    %c0_7 = arith.constant 0 : index
    %c0_8 = arith.constant 0 : index
    %17 = vector.load %arg4[%c0_7, %c0_8] : memref<4x128xf32, #tpu.memory_space<vmem>>, vector<4x128xf32>
    tpu.vector_store %arg4[%c0_7, %c0_8], %16 {strides = array<i32>} : memref<4x128xf32, #tpu.memory_space<vmem>>, vector<4x128xf32>,
    return
  }
  func.func @transform_0(%arg0: i32) -> (i32, i32) {
    %c0_i32 = arith.constant 0 : i32
    %c0_i32_0 = arith.constant 0 : i32
    return %arg0, %c0_i32 : i32, i32
  }
  func.func @transform_1(%arg0: i32) -> (i32, i32) {
    %c0_i32 = arith.constant 0 : i32
    %c0_i32_0 = arith.constant 0 : i32
    %c0_i32_1 = arith.constant 0 : i32
    return %c0_i32, %c0_i32_0 : i32, i32
  }
  func.func @transform_2(%arg0: i32) -> (i32, i32) {
    %c0_i32 = arith.constant 0 : i32
    %c0_i32_0 = arith.constant 0 : i32
    %c0_i32_1 = arith.constant 0 : i32
    return %c0_i32, %c0_i32_0 : i32, i32
  }
  func.func @transform_3(%arg0: i32) -> (i32, i32) {
    %c0_i32 = arith.constant 0 : i32
    %c0_i32_0 = arith.constant 0 : i32
    return %arg0, %c0_i32 : i32, i32
  }
}

</mosaic_0001>

<bundles_post_ra>
// kernel: tpu_custom_call.1
= control target key start
LH: loop header
LB: loop body
LE: loop exit
PB: predicated region body
PF: predicated region fallthrough
CT: control target
= control target key end

     0   :  { %8 = vsyncpa [#allocation3], 0  ;;  %s325_s0 = inlined_call_operand.hbm [shape: f32[4,128], index: 0, kind: input, shape index: {}]   ;;  %s326_s1 = inlined_call_operand.hbm [shape: bf16[128,128], index: 1, kind: input, shape index: {}]   ;;  %s327_s2 = inlined_call_operand.vmem [shape: f32[1,128], index: 2, kind: input, shape index: {}]   ;;  %s328_s3 = inlined_call_operand.hbm [shape: f32[4,4], index: 3, kind: output, shape index: {}]  }
   0x1   :  { %9 = vsyncpa [#allocation6], 0 }
   0x2   :  { %10 = vsyncpa [#allocation4], 0  ;;  %s16_s14 = sshll.u32 %s325_s0, 4  ;;  %s288_s15 = smov [#allocation2]   ;;  %s17_s14 = int_to_ptr.hbm [resolvable:$true] %s16_s14 }
   0x3   :  { %s18_s16 = sshll.u32 %s288_s15, 4  ;;  %s26_s19 = sshll.u32 %s326_s1, 4  ;;  %s19_s16 = int_to_ptr.vmem [resolvable:$true] %s18_s16  ;;  %s27_s19 = int_to_ptr.hbm [resolvable:$true] %s26_s19 }
   0x4   :  { %21 = dma.hbm_to_vmem [thread:$0]  %s17_s14, 64, %s19_s16, [#allocation3]  }
   0x5   :  { %s289_s20 = smov [#allocation5]   ;;  %s290_s22 = smov 64  }
   0x6   :  { %s28_s21 = sshll.u32 %s289_s20, 4  ;;  %s291_s23 = smov 4   ;;  %s29_s21 = int_to_ptr.vmem [resolvable:$true] %s28_s21 }
   0x7   :  { %34 = dma.hbm_to_vmem [thread:$0]  %s27_s19, 1024, %s29_s21, [#allocation6], %s290_s22, %s290_s22, %s291_s23  }
   0x8   :  { %282 = dma.done.wait [#allocation3], 64  }
   0x9   :  { %283 = vsyncadd [#allocation3], 4294967232 }
   0xa   :  { %284 = dma.done.wait [#allocation6], 1024  }
   0xb   :  { %285 = vsyncadd [#allocation6], 4294966272  ;;  %v199_v0 = vld [vmem:[#allocation5 + $0x38] sm:$0xff]  ;;  %v198_v1 = vld [vmem:[#allocation5 + $0x30] sm:$0xff]  ;;  %vm128_vm0 = vcmask 1043456   ;;  %s292_s24 = smov [#allocation7]  }
   0xc   :  { %115 = vmatpush.bf16.msra.mxu0 %v199_v0  ;;  %v197_v2 = vld [vmem:[#allocation5 + $0x28] sm:$0xff]  ;;  %v196_v3 = vld [vmem:[#allocation5 + $0x20] sm:$0xff]  ;;  %v195_v4 = vld [vmem:[#allocation5 + $0x18] sm:$0xff]  ;;  %s147_s25 = sshll.u32 %s292_s24, 4  ;;  %s149_s27 = sshll.u32 %s328_s3, 4  ;;  %s148_s25 = int_to_ptr.vmem [resolvable:$true] %s147_s25  ;;  %s150_s27 = int_to_ptr.hbm [resolvable:$true] %s149_s27 }
   0xd   :  { %v194_v5 = vld [vmem:[#allocation5 + $0x10] sm:$0xff]  ;;  %v193_v6 = vld [vmem:[#allocation5 + $0x8] sm:$0xff]  ;;  %v192_v7 = vld [vmem:[#allocation5] sm:$0xff] }
   0xe   :  { %v45_v8 = vld [vmem:[#allocation2] sm:$0xf] }
   0xf   :  { %v46_v9 = vpack.c.bf16 %v45_v8, %v45_v8  ;;  %v205_v10 = vld [vmem:[%s327_s2] ss:$0 sm:$0xff] }
  0x10   :  { %116 = vmatpush.bf16.msra.mxu0 %v198_v1 }
  0x14   :  { %117 = vmatpush.bf16.msra.mxu0 %v197_v2 }
  0x18   :  { %118 = vmatpush.bf16.msra.mxu0 %v196_v3 }
  0x1c   :  { %119 = vmatpush.bf16.msra.mxu0 %v195_v4 }
  0x20   :  { %120 = vmatpush.bf16.msra.mxu0 %v194_v5 }
  0x24   :  { %121 = vmatpush.bf16.msra.mxu0 %v193_v6 }
  0x28   :  { %122 = vmatpush.bf16.msra.mxu0 %v192_v7 }
  0x2b   :  { %123 = vmatmul.bf16.vlgmr.msra.gmra.mxu0 %v46_v9 }
  0xa8   :  { %v124_v11 = vpop.f32.mrf.mxu0 }
  0xa9   :  { %v125_v12 = vadd.f32 %v205_v10, %v124_v11 }
  0xab   :  { %v129_v13 = vsel %vm128_vm0, %v125_v12, -inf }
  0xac   :  { %130 = vmax.xlane.f32.xlu0 %v129_v13 }
  0xb0   :  { %v126_v14 = vpop.f32.mrf.mxu0 }
 0x11f   :  { %v131_v15 = vpop.xlane.xlu0 %130 }
 0x120   :  { %v132_v16 = vsub.f32 %v125_v12, %v131_v15 }
 0x122   :  { %v133_v17 = vmul.f32 1.442695, %v132_v16 }
 0x124   :  { %206 = vpow2.f32 %v133_v17 }
 0x12a   :  { %v207_v18 = vpop.eup %206 }
 0x12b   :  { %v135_v19 = vsel %vm128_vm0, %v207_v18, 0.0 }
 0x12c   :  { %136 = vadd.xlane.f32.xlu0 %v135_v19 }
 0x19f   :  { %v137_v20 = vpop.xlane.xlu0 %136 }
 0x1a0   :  { %208 = vlog2.f32 %v137_v20 }
 0x1a6   :  { %v209_v21 = vpop.eup %208 }
 0x1a7   :  { %v139_v22 = vmul.f32 0.6931472, %v209_v21 }
 0x1a9   :  { %v140_v23 = vsub.f32 %v132_v16, %v139_v22 }
 0x1ab   :  { %141 = vst [vmem:[#allocation7] sm:$0xf] %v140_v23 }
 0x1ac   :  { %152 = dma.vmem_to_hbm [thread:$0]  %s148_s25, 64, %s150_s27, [#allocation4]  }
 0x1ad   :  { %286 = dma.done.wait [#allocation4], 64  }
 0x1ae   :  { %287 = vsyncadd [#allocation4], 4294967232 }
 0x1af   :  { %157 = vsyncpa [#allocation3], 1 }
 0x1b0   :  { %158 = vsyncpa [#allocation6], 1 }
 0x1b1   :  { %159 = vsyncpa [#allocation4], 1 }

</bundles_post_ra>
